<compile_context>
chip_gen: v7x
topology: tpu7x:2x2x1
jax: 0.10.0
libtpu: 0.0.40
codegen_flags: <defaults>
</compile_context>

<pallas_src>
import jax
import jax.numpy as jnp
from jax.experimental import pallas as pl
from jax.experimental.pallas import tpu as pltpu


def tcn_block_kernel(x2_ref, wa_ref, wb_ref, b_ref, o_ref):
    # x2_ref: (NB * Rp, 2C)   packed pair-rows; Rp % 8 == 0, Rp >= Lo + 1 per batch
    # wa_ref, wb_ref: (2C, 2C) stacked conv taps, columns = [even phase | odd phase]
    # b_ref : (1, 2C)          bias replicated for both phases
    # o_ref : (NB, C, Lo)      NCL output block
    nb, c, lo = o_ref.shape
    rows = x2_ref.shape[0]
    rp = rows // nb

    # Two overlapping row views (packed rows t and t+1).  Sliced loads keep exact
    # semantics; pltpu.roll on a single full load is the micro-opt alternative.
    f0 = x2_ref[pl.ds(0, rows - 1), :]   # row t   -> [x_pad[2t]   | x_pad[2t+1]]
    f1 = x2_ref[pl.ds(1, rows - 1), :]   # row t+1 -> [x_pad[2t+2] | x_pad[2t+3]]

    # Both conv phases with two K=128 matmuls (f32 accumulate on the MXU).
    conv = (b_ref[...]
            + jnp.dot(f0, wa_ref[...], preferred_element_type=jnp.float32)
            + jnp.dot(f1, wb_ref[...], preferred_element_type=jnp.float32))
    conv_even = conv[:, :c]
    conv_odd = conv[:, c:]

    # max_pool1d(relu == relu(max_pool1d(, k=2)) since relu is monotone.
    y = jnp.maximum(jnp.maximum(conv_even, conv_odd), 0.0)

    # Residual branch: max_pool1d(x, 2)[t] = max(x[2t], x[2t+1])
    #                                      = max(x_pad[2t+1], x_pad[2t+2]).
    pooled_x = jnp.maximum(f0[:, c:], f1[:, :c])

    res = (pooled_x + y).astype(o_ref.dtype)          # (rows - 1, C)

    # Per folded batch: keep the Lo valid rows, transpose in VMEM, store NCL slab.
    for i in range(nb):                               # static unroll
        o_ref[i, :, :] = res[i * rp:i * rp + lo, :].T


def _round_up(v, m):
    return (v + m - 1) // m * m


def _pick_batch_fold(n, rp, target_rows=1024):
    """Batches folded per grid step: big blocks, but keep >= 2 grid steps if possible."""
    nb = max(1, min(n, max(1, target_rows // rp)))
    while n % nb:
        nb -= 1
    if n // nb < 2 and nb > 1:
        nb = max(1, nb // 2)
        while n % nb:
            nb -= 1
    return nb


@jax.jit
def tcn_block_forward(x, w, b):
    """x: (N, C, L) float32 (PyTorch NCL); w: (C_out, C_in, K); b: (C_out,). Returns (N, C, L//2)."""
    N, C, L = x.shape
    C_out, C_in, K = w.shape
    assert C_out == C_in == C and K == 3, "kernel specialised to square channels, conv_len=3"
    assert L % 2 == 0, "TcnBlock forward assumes an even sequence length (stride=2)"
    Lo = L // 2
    Rp = _round_up(Lo + 1, 8)          # packed pair-rows per batch, sublane aligned
    NB = _pick_batch_fold(N, Rp)
    G = N // NB

    # ---- single fused input pass: NCL -> padded NLC; then zero-copy pair packing ----
    x_nlc = jnp.transpose(x, (0, 2, 1))                                   # (N, L, C)
    x_pad = jnp.pad(x_nlc, ((0, 0), (1, 2 * Rp - L - 1), (0, 0)))         # (N, 2*Rp, C)
    x2 = x_pad.reshape(N * Rp, 2 * C)                                     # bitcast reshape

    # ---- stacked tap weights: [conv_even | conv_odd] = r_t @ WA + r_{t+1} @ WB + b2 ----
    wk = jnp.transpose(w, (2, 1, 0))                                      # (K, C_in, C_out)
    w0, w1, w2 = wk[0], wk[1], wk[2]
    zeros = jnp.zeros((C, C), w.dtype)
    WA = jnp.concatenate([jnp.concatenate([w0, zeros], axis=1),
                          jnp.concatenate([w1, w0], axis=1)], axis=0)     # (2C, 2C)
    WB = jnp.concatenate([jnp.concatenate([w2, w1], axis=1),
                          jnp.concatenate([zeros, w2], axis=1)], axis=0)  # (2C, 2C)
    b2 = jnp.concatenate([b, b]).reshape(1, 2 * C)

    try:
        vmem_cap = pltpu.get_tpu_info().vmem_capacity_bytes
    except Exception:
        vmem_cap = 64 * 1024 * 1024
    vmem_limit = int(vmem_cap * 3 // 4)

    itemsize = jnp.dtype(x.dtype).itemsize
    cost = pl.CostEstimate(
        flops=2 * 2 * (N * Rp) * (2 * C) * (2 * C),
        transcendentals=0,
        bytes_accessed=(N * Rp * 2 * C + 2 * (2 * C) * (2 * C) + 2 * C + N * C * Lo) * itemsize,
    )

    # TODO(synk): for very long sequences, additionally tile the packed-row axis
    # (with a 1-row halo) so a single block always fits v7x's 64 MiB VMEM.
    out = pl.pallas_call(
        tcn_block_kernel,
        out_shape=jax.ShapeDtypeStruct((N, C, Lo), x.dtype),
        grid=(G,),
        in_specs=[
            pl.BlockSpec((NB * Rp, 2 * C), lambda g: (g, 0)),
            pl.BlockSpec((2 * C, 2 * C), lambda g: (0, 0)),
            pl.BlockSpec((2 * C, 2 * C), lambda g: (0, 0)),
            pl.BlockSpec((1, 2 * C), lambda g: (0, 0)),
        ],
        out_specs=pl.BlockSpec((NB, C, Lo), lambda g: (g, 0, 0)),
        compiler_params=pltpu.CompilerParams(
            dimension_semantics=("parallel",),
            vmem_limit_bytes=vmem_limit,
        ),
        cost_estimate=cost,
    )(x2, WA, WB, b2)

    return out                                                            # NCL, no XLA transpose


def tcn_block_ref(x, w, b):
    """Pure-JAX reference matching the PyTorch forward (NCL layout)."""
    N, C, L = x.shape
    K = w.shape[-1]
    pad = K // 2
    xp = jnp.pad(x, ((0, 0), (0, 0), (pad, pad)))
    conv = b[None, :, None] + sum(
        jnp.einsum('ncl,dc->ndl', xp[:, :, k:k + L], w[:, :, k]) for k in range(K))
    y = jnp.max(jnp.maximum(conv, 0.0).reshape(N, C, L // 2, 2), axis=-1)
    px = jnp.max(x.reshape(N, C, L // 2, 2), axis=-1)
    return px + y


if __name__ == "__main__":
    channels = 64      # TcnBlock default
    conv_len = 3
    batch, length = 2, 16

    key = jax.random.PRNGKey(0)
    kx, kw, kb = jax.random.split(key, 3)
    x = jax.random.normal(kx, (batch, channels, length), dtype=jnp.float32)
    # conv1 parameters (deterministic synthetic init); conv2 of the module is
    # unused by forward() so it is not materialized.
    w1 = 0.1 * jax.random.normal(kw, (channels, channels, conv_len), dtype=jnp.float32)
    b1 = 0.1 * jax.random.normal(kb, (channels,), dtype=jnp.float32)

    out = tcn_block_forward(x, w1, b1)
    out = jax.block_until_ready(out)

    ref = tcn_block_ref(x, w1, b1)
    assert out.shape == (batch, channels, length // 2), out.shape
    assert jnp.allclose(out, ref, atol=2e-3, rtol=2e-3), "mismatch vs reference"

    print("KERNEL_OK")
</pallas_src>

<mosaic_0001>
module attributes {stable_mosaic.version = 11 : i64} {
  func.func @tcn_block_kernel(%arg0: i32, %arg1: memref<16x128xf32, #tpu.memory_space<vmem>>, %arg2: memref<128x128xf32, #tpu.memory_space<vmem>>, %arg3: memref<128x128xf32, #tpu.memory_space<vmem>>, %arg4: memref<1x128xf32, #tpu.memory_space<vmem>>, %arg5: memref<1x64x8xf32, #tpu.memory_space<vmem>>) attributes {dimension_semantics = [#tpu.dimension_semantics<parallel>], iteration_bounds = array<i64: 2>, scalar_prefetch = 0 : i64, scratch_operands = 0 : i64, tpu.core_type = #tpu.core_type<tc>, window_params = [{transform_indices = @transform_0, window_bounds = array<i64: 16, 128>}, {pipeline_mode = #tpu.pipeline_mode<synchronous>, transform_indices = @transform_1, window_bounds = array<i64: 128, 128>}, {pipeline_mode = #tpu.pipeline_mode<synchronous>, transform_indices = @transform_2, window_bounds = array<i64: 128, 128>}, {pipeline_mode = #tpu.pipeline_mode<synchronous>, transform_indices = @transform_3, window_bounds = array<i64: 1, 128>}, {transform_indices = @transform_4, window_bounds = array<i64: 1, 64, 8>}]} {
    %c0 = arith.constant 0 : index
    %c0_0 = arith.constant 0 : index
    %0 = vector.load %arg1[%c0, %c0_0] : memref<16x128xf32, #tpu.memory_space<vmem>>, vector<15x128xf32>
    %c1 = arith.constant 1 : index
    %c0_1 = arith.constant 0 : index
    %1 = vector.load %arg1[%c1, %c0_1] : memref<16x128xf32, #tpu.memory_space<vmem>>, vector<15x128xf32>
    %c0_2 = arith.constant 0 : index
    %c0_3 = arith.constant 0 : index
    %2 = vector.load %arg4[%c0_2, %c0_3] : memref<1x128xf32, #tpu.memory_space<vmem>>, vector<1x128xf32>
    %c0_4 = arith.constant 0 : index
    %c0_5 = arith.constant 0 : index
    %3 = vector.load %arg2[%c0_4, %c0_5] : memref<128x128xf32, #tpu.memory_space<vmem>>, vector<128x128xf32>
    %cst = arith.constant dense<0.000000e+00> : vector<15x128xf32>
    %4 = tpu.matmul %0, %3, %cst {dimension_numbers = #tpu.dot_dimension_numbers<[1], [0], [0], [1], [0, 0, 1, 1], [], []>} : vector<15x128xf32>, vector<128x128xf32>, vector<15x128xf32> -> vector<15x128xf32>
    %5 = vector.broadcast %2 : vector<1x128xf32> to vector<15x128xf32>
    %6 = arith.addf %5, %4 : vector<15x128xf32>
    %c0_6 = arith.constant 0 : index
    %c0_7 = arith.constant 0 : index
    %7 = vector.load %arg3[%c0_6, %c0_7] : memref<128x128xf32, #tpu.memory_space<vmem>>, vector<128x128xf32>
    %cst_8 = arith.constant dense<0.000000e+00> : vector<15x128xf32>
    %8 = tpu.matmul %1, %7, %cst_8 {dimension_numbers = #tpu.dot_dimension_numbers<[1], [0], [0], [1], [0, 0, 1, 1], [], []>} : vector<15x128xf32>, vector<128x128xf32>, vector<15x128xf32> -> vector<15x128xf32>
    %9 = arith.addf %6, %8 : vector<15x128xf32>
    %10 = vector.extract_strided_slice %9 {offsets = [0, 0], sizes = [15, 64], strides = [1, 1]} : vector<15x128xf32> to vector<15x64xf32>
    %11 = vector.extract_strided_slice %9 {offsets = [0, 64], sizes = [15, 64], strides = [1, 1]} : vector<15x128xf32> to vector<15x64xf32>
    %12 = arith.maximumf %10, %11 : vector<15x64xf32>
    %cst_9 = arith.constant 0.000000e+00 : f32
    %13 = vector.broadcast %cst_9 : f32 to vector<15x64xf32>
    %14 = arith.maximumf %12, %13 : vector<15x64xf32>
    %15 = vector.extract_strided_slice %0 {offsets = [0, 64], sizes = [15, 64], strides = [1, 1]} : vector<15x128xf32> to vector<15x64xf32>
    %16 = vector.extract_strided_slice %1 {offsets = [0, 0], sizes = [15, 64], strides = [1, 1]} : vector<15x128xf32> to vector<15x64xf32>
    %17 = arith.maximumf %15, %16 : vector<15x64xf32>
    %18 = arith.addf %17, %14 : vector<15x64xf32>
    %19 = vector.extract_strided_slice %18 {offsets = [0, 0], sizes = [8, 64], strides = [1, 1]} : vector<15x64xf32> to vector<8x64xf32>
    %20 = tpu.transpose %19, [1, 0] : vector<8x64xf32> -> vector<64x8xf32>
    %c0_10 = arith.constant 0 : index
    %c0_11 = arith.constant 0 : index
    %c0_12 = arith.constant 0 : index
    %21 = vector.load %arg5[%c0_10, %c0_11, %c0_12] : memref<1x64x8xf32, #tpu.memory_space<vmem>>, vector<1x64x8xf32>
    %22 = vector.shape_cast %21 : vector<1x64x8xf32> to vector<64x8xf32>
    %23 = vector.shape_cast %20 : vector<64x8xf32> to vector<1x64x8xf32>
    tpu.vector_store %arg5[%c0_10, %c0_11, %c0_12], %23 {strides = array<i32>} : memref<1x64x8xf32, #tpu.memory_space<vmem>>, vector<1x64x8xf32>,
    return
  }
  func.func @transform_0(%arg0: i32) -> (i32, i32) {
    %c0_i32 = arith.constant 0 : i32
    %c0_i32_0 = arith.constant 0 : i32
    return %arg0, %c0_i32 : i32, i32
  }
  func.func @transform_1(%arg0: i32) -> (i32, i32) {
    %c0_i32 = arith.constant 0 : i32
    %c0_i32_0 = arith.constant 0 : i32
    %c0_i32_1 = arith.constant 0 : i32
    return %c0_i32, %c0_i32_0 : i32, i32
  }
  func.func @transform_2(%arg0: i32) -> (i32, i32) {
    %c0_i32 = arith.constant 0 : i32
    %c0_i32_0 = arith.constant 0 : i32
    %c0_i32_1 = arith.constant 0 : i32
    return %c0_i32, %c0_i32_0 : i32, i32
  }
  func.func @transform_3(%arg0: i32) -> (i32, i32) {
    %c0_i32 = arith.constant 0 : i32
    %c0_i32_0 = arith.constant 0 : i32
    %c0_i32_1 = arith.constant 0 : i32
    return %c0_i32, %c0_i32_0 : i32, i32
  }
  func.func @transform_4(%arg0: i32) -> (i32, i32, i32) {
    %c0_i32 = arith.constant 0 : i32
    %c0_i32_0 = arith.constant 0 : i32
    %c0_i32_1 = arith.constant 0 : i32
    return %arg0, %c0_i32, %c0_i32_0 : i32, i32, i32
  }
}

</mosaic_0001>

<bundles_post_ra>
// kernel: tcn_block_forward.1
= control target key start
LH: loop header
LB: loop body
LE: loop exit
PB: predicated region body
PF: predicated region fallthrough
CT: control target
= control target key end

     0   :  { %s738_s15 = smov 0   ;;  %s877_s0 = inlined_call_operand.vmem [shape: f32[32,128], index: 0, kind: input, shape index: {}]   ;;  %s878_s1 = inlined_call_operand.vmem [shape: f32[128,128], index: 1, kind: input, shape index: {}]   ;;  %s879_s2 = inlined_call_operand.vmem [shape: f32[128,128], index: 2, kind: input, shape index: {}]   ;;  %s880_s3 = inlined_call_operand.vmem [shape: f32[1,128], index: 3, kind: input, shape index: {}]   ;;  %s881_s4 = inlined_call_operand.vmem [shape: f32[2,64,8], index: 4, kind: output, shape index: {}]  }
   0x1 LB: > { %s744_s16 = sadd.s32 4294967295, %s710_s15   ;;  %p513_p0 = scmp.ge.s32.totalorder %s710_s15, 1  ;;  %s710_s15 = sphi %s738_s15, %s14_s15  }
   0x2   : > { %p163_p1 = scmp.lt.s32.totalorder %s710_s15, 3 }
   0x4   : > { %p164_p2 = pnand %p513_p0, %p163_p1 }
   0x5   : > { %v205_v0 = vld [vmem:[%s878_s1] sm:$0xff] (!%p164_p2)  ;;  %v206_v1 = vld [vmem:[%s878_s1 + $0x8] sm:$0xff] (!%p164_p2)  ;;  %s514_s23 = sshll.u32 (!%p164_p2), %s744_s16, 1  ;;  %v207_v5 = vld [vmem:[%s878_s1 + $0x10] sm:$0xff] (!%p164_p2)  ;;  %s712_s17 = smov (!%p164_p2), 64   ;;  %vm445_vm0 = vcmask (!%p164_p2), 64512  }
   0x6   : > { %167 = sbr.rel (%p164_p2) target bundleno = 766 (0x2fe), region = 36  ;;  %v302_v2 = vld [vmem:[%s879_s2] sm:$0xff] (!%p164_p2)  ;;  %v628_v3 = vpack.c.bf16 (!%p164_p2), %v206_v1, %v205_v0  ;;  %v303_v4 = vld [vmem:[%s879_s2 + $0x8] sm:$0xff] (!%p164_p2)  ;;  %v208_v6 = vld [vmem:[%s878_s1 + $0x18] sm:$0xff] (!%p164_p2)  ;;  %p190_p3 = scmp.lt.s32.totalorder (!%p164_p2), %s514_s23, 3 }
   0x7   : > { %v660_v7 = vpack.c.bf16 (!%p164_p2), %v303_v4, %v302_v2  ;;  %v632_v8 = vpack.c.bf16 (!%p164_p2), %v208_v6, %v207_v5  ;;  %v304_v9 = vld [vmem:[%s879_s2 + $0x10] sm:$0xff] (!%p164_p2)  ;;  %v305_v10 = vld [vmem:[%s879_s2 + $0x18] sm:$0xff] (!%p164_p2)  ;;  %v209_v11 = vld [vmem:[%s878_s1 + $0x20] sm:$0xff] (!%p164_p2)  ;;  %p195_p4 = scmp.lt.s32.totalorder (!%p164_p2), %s744_s16, 1 }
   0x8   : > { %629 = vmatprep.subr.bf16.mxu1 (!%p164_p2), %v628_v3  ;;  %v664_v12 = vpack.c.bf16 (!%p164_p2), %v305_v10, %v304_v9  ;;  %v210_v13 = vld [vmem:[%s878_s1 + $0x28] sm:$0xff] (!%p164_p2)  ;;  %v306_v14 = vld [vmem:[%s879_s2 + $0x20] sm:$0xff] (!%p164_p2)  ;;  %v211_v18 = vld [vmem:[%s878_s1 + $0x30] sm:$0xff] (!%p164_p2) }
   0x9   : > { %v307_v15 = vld [vmem:[%s879_s2 + $0x28] sm:$0xff] (!%p164_p2)  ;;  %631 = vmatpush3.bf16.msra.mxu1 (!%p164_p2), %v628_v3  ;;  %661 = vmatprep.subr.bf16.mxu0 (!%p164_p2), %v660_v7  ;;  %v636_v16 = vpack.c.bf16 (!%p164_p2), %v210_v13, %v209_v11  ;;  %v212_v19 = vld [vmem:[%s878_s1 + $0x38] sm:$0xff] (!%p164_p2)  ;;  %v308_v20 = vld [vmem:[%s879_s2 + $0x30] sm:$0xff] (!%p164_p2) }
   0xa   : > { %663 = vmatpush3.bf16.msra.mxu0 (!%p164_p2), %v660_v7  ;;  %633 = vmatprep.subr.bf16.mxu1 (!%p164_p2), %v632_v8  ;;  %v668_v17 = vpack.c.bf16 (!%p164_p2), %v307_v15, %v306_v14  ;;  %v309_v21 = vld [vmem:[%s879_s2 + $0x38] sm:$0xff] (!%p164_p2)  ;;  %v640_v22 = vpack.c.bf16 (!%p164_p2), %v212_v19, %v211_v18  ;;  %v213_v24 = vld [vmem:[%s878_s1 + $0x40] sm:$0xff] (!%p164_p2)  ;;  %v214_v25 = vld [vmem:[%s878_s1 + $0x48] sm:$0xff] (!%p164_p2) }
   0xb   : > { %665 = vmatprep.subr.bf16.mxu0 (!%p164_p2), %v664_v12  ;;  %v672_v23 = vpack.c.bf16 (!%p164_p2), %v309_v21, %v308_v20  ;;  %v310_v27 = vld [vmem:[%s879_s2 + $0x40] sm:$0xff] (!%p164_p2)  ;;  %v311_v28 = vld [vmem:[%s879_s2 + $0x48] sm:$0xff] (!%p164_p2)  ;;  %v644_v30 = vpack.c.bf16 (!%p164_p2), %v214_v25, %v213_v24  ;;  %v215_v32 = vld [vmem:[%s878_s1 + $0x50] sm:$0xff] (!%p164_p2) }
   0xc   : > { %v676_v31 = vpack.c.bf16 (!%p164_p2), %v311_v28, %v310_v27  ;;  %v216_v33 = vld [vmem:[%s878_s1 + $0x58] sm:$0xff] (!%p164_p2)  ;;  %v312_v34 = vld [vmem:[%s879_s2 + $0x50] sm:$0xff] (!%p164_p2)  ;;  %v217_v38 = vld [vmem:[%s878_s1 + $0x60] sm:$0xff] (!%p164_p2) }
   0xd   : > { %s883_s23 = smov (!%p190_p3, %s514_s23), 3  ;;  %635 = vmatpush3.bf16.msra.mxu1 %v632_v8  ;;  %v313_v35 = vld [vmem:[%s879_s2 + $0x58] sm:$0xff]  ;;  %v648_v36 = vpack.c.bf16 %v216_v33, %v215_v32  ;;  %v218_v39 = vld [vmem:[%s878_s1 + $0x68] sm:$0xff]  ;;  %v314_v40 = vld [vmem:[%s879_s2 + $0x60] sm:$0xff]  ;;  %s885_s16 = smov (!%p195_p4, %s744_s16), 1 }
   0xe   : > { %s515_s18 = sshll.u32 %s883_s23, 3  ;;  %667 = vmatpush3.bf16.msra.mxu0 %v664_v12  ;;  %637 = vmatprep.subr.bf16.mxu1 %v636_v16  ;;  %v680_v37 = vpack.c.bf16 %v313_v35, %v312_v34  ;;  %v315_v41 = vld [vmem:[%s879_s2 + $0x68] sm:$0xff]  ;;  %v652_v42 = vpack.c.bf16 %v218_v39, %v217_v38  ;;  %v219_v44 = vld [vmem:[%s878_s1 + $0x70] sm:$0xff]  ;;  %v220_v45 = vld [vmem:[%s878_s1 + $0x78] sm:$0xff] }
   0xf   : > { %s800_s29 = scalar_lea.vmem %s877_s0, %s515_s18  ;;  %669 = vmatprep.subr.bf16.mxu0 %v668_v17  ;;  %v684_v43 = vpack.c.bf16 %v315_v41, %v314_v40  ;;  %v316_v46 = vld [vmem:[%s879_s2 + $0x70] sm:$0xff]  ;;  %v317_v47 = vld [vmem:[%s879_s2 + $0x78] sm:$0xff]  ;;  %v656_v48 = vpack.c.bf16 %v220_v45, %v219_v44  ;;  %v518_v52 = vld [vmem:[%s880_s3] ss:$0 sm:$0xff] }
  0x10   : > { %v809_v26 = vld [vmem:[%s800_s29] sm:$0xff]  ;;  %v688_v49 = vpack.c.bf16 %v317_v47, %v316_v46  ;;  %v201_v50 = vld [vmem:[%s800_s29 + $0x8] sm:$0x7f] }
  0x11   : > { %590 = vmatprep.mubr.f32.mxu1 %v809_v26  ;;  %v202_v29 = vld [vmem:[%s800_s29 + $0x1] sm:$0xff]  ;;  %639 = vmatpush3.bf16.msra.mxu1 %v636_v16  ;;  %v203_v51 = vld [vmem:[%s800_s29 + $0x9] sm:$0x7f]  ;;  %s521_s29 = sshll.u32 %s885_s16, 6 }
  0x12   : > { %625 = vmatprep.mubr.f32.mxu0 %v202_v29  ;;  %671 = vmatpush3.bf16.msra.mxu0 %v668_v17  ;;  %s199_s20 = scalar_lea.vmem %s881_s4, %s521_s29 }
  0x13   : > { %641 = vmatprep.subr.bf16.mxu1 %v640_v22  ;;  %673 = vmatprep.subr.bf16.mxu0 %v672_v23 }
  0x15   : > { %643 = vmatpush3.bf16.msra.mxu1 %v640_v22 }
  0x16   : > { %675 = vmatpush3.bf16.msra.mxu0 %v672_v23  ;;  %645 = vmatprep.subr.bf16.mxu1 %v644_v30 }
  0x17   : > { %677 = vmatprep.subr.bf16.mxu0 %v676_v31 }
  0x19   : > { %647 = vmatpush3.bf16.msra.mxu1 %v644_v30 }
  0x1a   : > { %679 = vmatpush3.bf16.msra.mxu0 %v676_v31  ;;  %649 = vmatprep.subr.bf16.mxu1 %v648_v36 }
  0x1b   : > { %681 = vmatprep.subr.bf16.mxu0 %v680_v37 }
  0x1d   : > { %651 = vmatpush3.bf16.msra.mxu1 %v648_v36 }
  0x1e   : > { %683 = vmatpush3.bf16.msra.mxu0 %v680_v37  ;;  %653 = vmatprep.subr.bf16.mxu1 %v652_v42 }
  0x1f   : > { %685 = vmatprep.subr.bf16.mxu0 %v684_v43 }
  0x21   : > { %655 = vmatpush3.bf16.msra.mxu1 %v652_v42 }
  0x22   : > { %687 = vmatpush3.bf16.msra.mxu0 %v684_v43  ;;  %657 = vmatprep.subr.bf16.mxu1 %v656_v48 }
  0x23   : > { %689 = vmatprep.subr.bf16.mxu0 %v688_v49 }
  0x25   : > { %659 = vmatpush3.bf16.msra.mxu1 %v656_v48 }
  0x26   : > { %691 = vmatpush3.bf16.msra.mxu0 %v688_v49 }
  0x28   : > { %591 = vmatmul.mubr.f32.vlgmr.msra.gmra.mrb[0].mxu1 %v201_v50 }
  0x29   : > { %626 = vmatmul.mubr.f32.vlgmr.msra.gmra.mrb[0].mxu0 %v203_v51 }
  0xfb   : > { %v592_v53 = vpop.f32.mrb[0].mxu1 }
  0xfc   : > { %v287_v54 = vpop.f32.mrb[1].mxu1  ;;  %v627_v55 = vpop.f32.mrb[0].mxu0 }
  0xfd   : > { %v301_v56 = vadd.f32 %v518_v52, %v287_v54  ;;  %v384_v57 = vpop.f32.mrb[1].mxu0 }
  0xff   : > { %v392_v58 = vadd.f32 %v384_v57, %v301_v56 }
 0x101   : > { %394 = vrot.lane.b32.xlu0 %v392_v58, %s712_s17 }
 0x105   : > { %400 = vrot.lane.b32.xlu0 %v202_v29, %s712_s17 }
 0x173   : > { %v395_v59 = vpop.permute.xlu0 %394 }
 0x174   : > { %v397_v60 = vmax.f32 %v392_v58, %v395_v59 }
 0x176   : > { %v398_v61 = vmax.f32 %v397_v60, 0.0 }
 0x177   : > { %v401_v62 = vpop.permute.xlu0 %400 }
 0x178   : > { %405 = vrot.lane.b32.xlu1 %v398_v61, %s712_s17  ;;  %v403_v63 = vmax.f32 %v809_v26, %v401_v62 }
 0x1ea   : > { %v406_v0 = vpop.permute.xlu1 %405 }
 0x1eb   : > { %v408_v1 = vadd.f32 %v406_v0, %v403_v63 }
 0x1ed   : > { %410 = vrot.lane.b32.xlu1 %v408_v1, %s712_s17 }
 0x25f   : > { %v411_v2 = vpop.permute.xlu1 %410 }
 0x260   : > { %413 = vxpose.xlu0.b32.start.end [1/1] (short) (narrow) %v411_v2, 64 }
 0x2e0   : > { %v429_v3 = vpop.trf.xlu0 }
 0x2e1   : > { %446 = vst.msk [vmem:[%s199_s20] sm:$0xff] %vm445_vm0, %v429_v3 }
 0x2e4   : > { %v430_v4 = vpop.trf.xlu0 }
 0x2e5   : > { %447 = vst.msk [vmem:[%s199_s20 + $0x8] sm:$0xff] %vm445_vm0, %v430_v4 }
 0x2e8   : > { %v431_v5 = vpop.trf.xlu0 }
 0x2e9   : > { %448 = vst.msk [vmem:[%s199_s20 + $0x10] sm:$0xff] %vm445_vm0, %v431_v5 }
 0x2ec   : > { %v432_v6 = vpop.trf.xlu0 }
 0x2ed   : > { %449 = vst.msk [vmem:[%s199_s20 + $0x18] sm:$0xff] %vm445_vm0, %v432_v6 }
 0x2f0   : > { %v433_v7 = vpop.trf.xlu0 }
 0x2f1   : > { %450 = vst.msk [vmem:[%s199_s20 + $0x20] sm:$0xff] %vm445_vm0, %v433_v7 }
 0x2f4   : > { %v434_v8 = vpop.trf.xlu0 }
 0x2f5   : > { %451 = vst.msk [vmem:[%s199_s20 + $0x28] sm:$0xff] %vm445_vm0, %v434_v8 }
 0x2f8   : > { %v435_v9 = vpop.trf.xlu0 }
 0x2f9   : > { %452 = vst.msk [vmem:[%s199_s20 + $0x30] sm:$0xff] %vm445_vm0, %v435_v9 }
 0x2fc   : > { %v436_v10 = vpop.trf.xlu0 }
 0x2fd   : > { %453 = vst.msk [vmem:[%s199_s20 + $0x38] sm:$0xff] %vm445_vm0, %v436_v10 }
 0x2fe PF: > { %s14_s15 = sadd.s32 1, %s710_s15  }
 0x2ff   : > { %p11_p5 = scmp.ge.s32.totalorder %s14_s15, 4  }
 0x301   :  { %13 = sbr.rel (!%p11_p5) target bundleno = 1 (0x1), region = 66 }

</bundles_post_ra>
